<compile_context>
chip_gen: v7x
topology: tpu7x:2x2x1
jax: 0.10.0
libtpu: 0.0.40
codegen_flags: <defaults>
</compile_context>

<pallas_src>
import math

import jax
import jax.numpy as jnp
import numpy as np
from jax import lax
from jax.experimental import pallas as pl
from jax.experimental.pallas import tpu as pltpu

_UNROLL_C_LIMIT = 16  # fully unroll the channel loop up to this many classes


# ----------------------------------------------------------------------------
# Deterministic parameter setup (mirrors get_gaussian_kernel_2d / __init__).
# ----------------------------------------------------------------------------
def get_gaussian_kernel_2d(ksize: int, sigma: float) -> np.ndarray:
    ax = np.arange(ksize)
    x_grid = np.tile(ax, ksize).reshape(ksize, ksize).astype(np.float64)
    y_grid = x_grid.T
    mean = (ksize - 1) / 2.0
    variance = float(sigma) ** 2.0
    g = (1.0 / (2.0 * math.pi * variance + 1e-16)) * np.exp(
        -((x_grid - mean) ** 2.0 + (y_grid - mean) ** 2.0) / (2.0 * variance + 1e-16)
    )
    return g / g.sum()


def build_svls_effective_kernel(ksize: int = 3, sigma: float = 1.0) -> np.ndarray:
    """Effective 3x3 depthwise weights including the /svls_kernel.sum() in forward()."""
    gk = get_gaussian_kernel_2d(ksize=ksize, sigma=sigma)
    neighbors_sum = 1.0 - gk[ksize // 2, ksize // 2] + 1e-16
    gk[ksize // 2, ksize // 2] = neighbors_sum
    svls_kernel = gk / neighbors_sum                      # conv weight in the module
    eff = svls_kernel / svls_kernel.sum()                 # forward() divides by sum
    # The lse-folding (sum_c svls_c == 1 per pixel) relies on this:
    assert abs(float(eff.sum()) - 1.0) < 1e-9, eff.sum()
    return eff.astype(np.float64)


def build_separable_taps(ksize: int = 3, sigma: float = 1.0):
    """Decompose eff3x3 = s*(g1 (x) g1) + center_extra*delta  (exact for this module)."""
    eff = build_svls_effective_kernel(ksize=ksize, sigma=sigma)
    ax = np.arange(ksize, dtype=np.float64)
    mean = (ksize - 1) / 2.0
    e = np.exp(-((ax - mean) ** 2.0) / (2.0 * float(sigma) ** 2.0 + 1e-16))
    g1 = e / e.sum()
    mid = ksize // 2
    s = eff[0, 0] / (g1[0] * g1[0])
    center_extra = eff[mid, mid] - s * g1[mid] * g1[mid]
    recon = s * np.outer(g1, g1)
    recon[mid, mid] += center_extra
    assert np.allclose(recon, eff, atol=1e-9), (recon, eff)
    row_taps = tuple(float(v) for v in g1)
    col_taps = tuple(float(v) for v in (s * g1))
    # Gaussian tap symmetry used by the kernel (one fewer multiply per channel).
    assert abs(row_taps[0] - row_taps[2]) < 1e-12
    assert abs(col_taps[0] - col_taps[2]) < 1e-12
    return row_taps, col_taps, float(center_extra)


def _pick_tile_h(H, W, C, itemsize, prefer16=False, max_bytes=6 << 20):
    """Largest legal (multiple-of-8) divisor of H whose logits tile fits the budget.

    prefer16: for bf16 inputs, prefer multiples of 16 (sublane packing).
    Fallback: smallest legal tile (robustness on v7x's 64 MiB VMEM), then H.
    """
    best8 = best16 = smallest = None
    for th in range(8, H + 1, 8):
        if H % th:
            continue
        if smallest is None:
            smallest = th
        if C * th * W * itemsize <= max_bytes:
            best8 = th
            if th % 16 == 0:
                best16 = th
    if prefer16 and best16 is not None:
        return best16
    if best8 is not None:
        return best8
    if smallest is not None:
        # No tile fits the budget; take the smallest legal one rather than TH=H.
        # TODO(synk): add W-axis tiling (lane halo) for v7x worst cases.
        return smallest
    return H  # H has no multiple-of-8 divisor; full-height block is still legal.


# ----------------------------------------------------------------------------
# Pallas kernel
# ----------------------------------------------------------------------------
def _make_svls_ce_kernel(C, TH, W, row_taps, col_taps, center_extra):
    rw_edge, rw_mid = float(row_taps[0]), float(row_taps[1])   # rw0 == rw2
    cw_edge, cw_mid = float(col_taps[0]), float(col_taps[1])   # cw0 == cw2
    cex = float(center_extra)

    def kernel(labels_ref, logits_ref, out_ref):
        # labels_ref: (1, H+2, W+2) int32, edge-padded full label map for sample n
        # logits_ref: (1, C, TH, W)  logits tile in original NCHW layout (W on lanes)
        # out_ref:    (1, 1, 1, 1)   f32, per-(sample, tile) partial sum
        h = pl.program_id(1)
        start = h * TH
        if TH % 8 == 0:
            start = pl.multiple_of(start, 8)

        # (TH+2, W+2) label halo; wrapper edge-pad makes tile-seam replicate exact.
        lab = labels_ref[0, pl.ds(start, TH + 2), :]
        lab_l = lab[:, 0:W]            # left-neighbor column
        lab_c = lab[:, 1:W + 1]        # center column
        lab_r = lab[:, 2:W + 2]        # right-neighbor column

        def load(ch):
            return logits_ref[0, ch].astype(jnp.float32)

        def svls_times(ch, x):
            # Separable 3x3 SVLS target for channel ch, multiplied by logits x.
            eq_l = lab_l == ch
            eq_c = lab_c == ch         # reused for middle row tap AND center term
            eq_r = lab_r == ch
            row = (jnp.where(eq_l, rw_edge, 0.0)
                   + jnp.where(eq_c, rw_mid, 0.0)
                   + jnp.where(eq_r, rw_edge, 0.0))           # (TH+2, W)
            svls = (cw_edge * (row[0:TH] + row[2:TH + 2])     # symmetric column taps
                    + cw_mid * row[1:TH + 1]
                    + jnp.where(eq_c[1:TH + 1], cex, 0.0))    # (TH, W)
            return svls * x

        if C <= _UNROLL_C_LIMIT:
            # Pass 1: channel max.
            m = load(0)
            for ch in range(1, C):
                m = jnp.maximum(m, load(ch))
            # Pass 2 (fused): softmax denominator + SVLS-weighted logit accumulation.
            se = None
            acc = None
            for ch in range(C):
                x = load(ch)
                e = jnp.exp(x - m)
                se = e if se is None else se + e
                t = svls_times(ch, x)
                acc = t if acc is None else acc + t
        else:
            # Bounded-unroll loops keep vreg pressure / bundle size sane for big C.
            m = lax.fori_loop(1, C, lambda ch, m_: jnp.maximum(m_, load(ch)),
                              load(0), unroll=4)

            def body(ch, carry):
                se_, acc_ = carry
                x = load(ch)
                return se_ + jnp.exp(x - m), acc_ + svls_times(ch, x)

            zeros = jnp.zeros((TH, W), jnp.float32)
            se, acc = lax.fori_loop(0, C, body, (zeros, zeros), unroll=4)

        # Since sum_c svls_c == 1 exactly, per-pixel loss = lse - sum_c svls_c * x_c.
        lse = m + jnp.log(se)
        out_ref[...] = jnp.zeros((1, 1, 1, 1), jnp.float32) + jnp.sum(lse - acc)

    return kernel


def ce_loss_with_svls_2d(inputs_nchw, labels, *, classes, sigma=1.0, ksize=3, tile_h=None):
    """inputs_nchw: (N, C, H, W) logits (f32 or bf16); labels: (N, H, W) int. Scalar loss."""
    assert ksize == 3, "module is constructed with ksize=3"
    N, C, H, W = inputs_nchw.shape
    assert C == classes

    row_taps, col_taps, center_extra = build_separable_taps(ksize=ksize, sigma=sigma)

    itemsize = jnp.dtype(inputs_nchw.dtype).itemsize
    prefer16 = inputs_nchw.dtype == jnp.bfloat16
    TH = tile_h if tile_h is not None else _pick_tile_h(H, W, C, itemsize, prefer16=prefer16)
    assert H % TH == 0, "tile_h must divide H"
    assert TH == H or TH % 8 == 0, "tile_h must be a multiple of 8 (or equal H)"
    T = H // TH

    # No transpose and no wrapper upcast: NCHW logits go straight to the kernel
    # (W on lanes); each channel plane is cast to f32 inside the kernel.
    logits = inputs_nchw
    # Tiny edge-padded label map so in-kernel halo reads give exact replicate padding.
    labels_pad = jnp.pad(labels.astype(jnp.int32), ((0, 0), (1, 1), (1, 1)), mode="edge")

    # Honest VMEM budget: 2x logits tile (double buffer) + 2x label map + f32 temps,
    # floored at the 32 MiB scoped default, capped below v7x physical (64 MiB).
    logits_tile_bytes = C * TH * W * itemsize
    labels_bytes = (H + 2) * (W + 2) * 4
    temp_bytes = 16 * TH * W * 4
    vmem_needed = 2 * logits_tile_bytes + 2 * labels_bytes + temp_bytes + (2 << 20)
    vmem_limit = int(min(max(vmem_needed, 32 << 20), 64 << 20))

    kernel = _make_svls_ce_kernel(C, TH, W, row_taps, col_taps, center_extra)

    partials = pl.pallas_call(
        kernel,
        out_shape=jax.ShapeDtypeStruct((N, T, 1, 1), jnp.float32),
        grid_spec=pltpu.PrefetchScalarGridSpec(
            num_scalar_prefetch=0,
            grid=(N, T),
            in_specs=[
                pl.BlockSpec((1, H + 2, W + 2), lambda n, h: (n, 0, 0)),
                pl.BlockSpec((1, C, TH, W), lambda n, h: (n, 0, h, 0)),
            ],
            out_specs=pl.BlockSpec((1, 1, 1, 1), lambda n, h: (n, h, 0, 0)),
        ),
        compiler_params=pltpu.CompilerParams(
            dimension_semantics=("parallel", "parallel"),
            vmem_limit_bytes=vmem_limit,
        ),
    )(labels_pad, logits)

    return jnp.sum(partials) / jnp.float32(N * H * W)


# ----------------------------------------------------------------------------
# Pure-JAX reference (independent path: lax depthwise conv + jax.nn.log_softmax)
# ----------------------------------------------------------------------------
def reference_loss(inputs_nchw, labels, *, classes, sigma=1.0, ksize=3):
    eff_kernel = jnp.asarray(
        build_svls_effective_kernel(ksize=ksize, sigma=sigma).astype(np.float32))
    C = classes
    oh = jax.nn.one_hot(labels.astype(jnp.int32), C, dtype=jnp.float32)   # (N,H,W,C)
    oh_nchw = jnp.transpose(oh, (0, 3, 1, 2))
    padded = jnp.pad(oh_nchw, ((0, 0), (0, 0), (1, 1), (1, 1)), mode="edge")
    w = jnp.broadcast_to(eff_kernel[None, None], (C, 1, ksize, ksize))
    svls = jax.lax.conv_general_dilated(
        padded, w, (1, 1), "VALID",
        feature_group_count=C,
        dimension_numbers=("NCHW", "OIHW", "NCHW"),
    )
    logp = jax.nn.log_softmax(inputs_nchw.astype(jnp.float32), axis=1)
    return jnp.mean(jnp.sum(-svls * logp, axis=1))


# ----------------------------------------------------------------------------
if __name__ == "__main__":
    N, C, H, W = 2, 4, 16, 16
    key = jax.random.PRNGKey(0)
    k_in, k_lab = jax.random.split(key)
    inputs = jax.random.normal(k_in, (N, C, H, W), dtype=jnp.float32)
    labels = jax.random.randint(k_lab, (N, H, W), 0, C, dtype=jnp.int32)

    # Force TH=8 (two tiles per sample) to exercise the halo at tile seams,
    # plus the auto-tiled (whole-sample) path.
    loss_tiled = jax.block_until_ready(
        ce_loss_with_svls_2d(inputs, labels, classes=C, sigma=1.0, ksize=3, tile_h=8))
    loss_auto = jax.block_until_ready(
        ce_loss_with_svls_2d(inputs, labels, classes=C, sigma=1.0, ksize=3))

    ref = jax.block_until_ready(reference_loss(inputs, labels, classes=C, sigma=1.0, ksize=3))

    assert np.allclose(np.asarray(loss_tiled), np.asarray(ref), rtol=1e-5, atol=1e-5), (loss_tiled, ref)
    assert np.allclose(np.asarray(loss_auto), np.asarray(ref), rtol=1e-5, atol=1e-5), (loss_auto, ref)

    print("KERNEL_OK")
</pallas_src>

<mosaic_0001>
module attributes {stable_mosaic.version = 11 : i64} {
  func.func @kernel(%arg0: i32, %arg1: i32, %arg2: memref<1x18x18xi32, #tpu.memory_space<vmem>>, %arg3: memref<1x4x8x16xf32, #tpu.memory_space<vmem>>, %arg4: memref<1x1x1x1xf32, #tpu.memory_space<vmem>>) attributes {dimension_semantics = [#tpu.dimension_semantics<parallel>, #tpu.dimension_semantics<parallel>], iteration_bounds = array<i64: 2, 2>, scalar_prefetch = 0 : i64, scratch_operands = 0 : i64, tpu.core_type = #tpu.core_type<tc>, window_params = [{transform_indices = @transform_0, window_bounds = array<i64: 1, 18, 18>}, {transform_indices = @transform_1, window_bounds = array<i64: 1, 4, 8, 16>}, {transform_indices = @transform_2, window_bounds = array<i64: 1, 1, 1, 1>}]} {
    %c8_i32 = arith.constant 8 : i32
    %0 = arith.muli %arg1, %c8_i32 : i32
    %1 = tpu.assume_multiple %0, 8 : i32
    %c0 = arith.constant 0 : index
    %2 = arith.index_cast %1 : i32 to index
    %c0_0 = arith.constant 0 : index
    %3 = vector.load %arg2[%c0, %2, %c0_0] : memref<1x18x18xi32, #tpu.memory_space<vmem>>, vector<1x10x18xi32>
    %4 = vector.shape_cast %3 : vector<1x10x18xi32> to vector<10x18xi32>
    %5 = vector.extract_strided_slice %4 {offsets = [0, 0], sizes = [10, 16], strides = [1, 1]} : vector<10x18xi32> to vector<10x16xi32>
    %6 = vector.extract_strided_slice %4 {offsets = [0, 1], sizes = [10, 16], strides = [1, 1]} : vector<10x18xi32> to vector<10x16xi32>
    %7 = vector.extract_strided_slice %4 {offsets = [0, 2], sizes = [10, 16], strides = [1, 1]} : vector<10x18xi32> to vector<10x16xi32>
    %c0_1 = arith.constant 0 : index
    %c0_2 = arith.constant 0 : index
    %c0_3 = arith.constant 0 : index
    %c0_4 = arith.constant 0 : index
    %8 = vector.load %arg3[%c0_1, %c0_2, %c0_3, %c0_4] : memref<1x4x8x16xf32, #tpu.memory_space<vmem>>, vector<1x1x8x16xf32>
    %9 = vector.shape_cast %8 : vector<1x1x8x16xf32> to vector<8x16xf32>
    %c0_5 = arith.constant 0 : index
    %c1 = arith.constant 1 : index
    %c0_6 = arith.constant 0 : index
    %c0_7 = arith.constant 0 : index
    %10 = vector.load %arg3[%c0_5, %c1, %c0_6, %c0_7] : memref<1x4x8x16xf32, #tpu.memory_space<vmem>>, vector<1x1x8x16xf32>
    %11 = vector.shape_cast %10 : vector<1x1x8x16xf32> to vector<8x16xf32>
    %12 = arith.maximumf %9, %11 : vector<8x16xf32>
    %c0_8 = arith.constant 0 : index
    %c2 = arith.constant 2 : index
    %c0_9 = arith.constant 0 : index
    %c0_10 = arith.constant 0 : index
    %13 = vector.load %arg3[%c0_8, %c2, %c0_9, %c0_10] : memref<1x4x8x16xf32, #tpu.memory_space<vmem>>, vector<1x1x8x16xf32>
    %14 = vector.shape_cast %13 : vector<1x1x8x16xf32> to vector<8x16xf32>
    %15 = arith.maximumf %12, %14 : vector<8x16xf32>
    %c0_11 = arith.constant 0 : index
    %c3 = arith.constant 3 : index
    %c0_12 = arith.constant 0 : index
    %c0_13 = arith.constant 0 : index
    %16 = vector.load %arg3[%c0_11, %c3, %c0_12, %c0_13] : memref<1x4x8x16xf32, #tpu.memory_space<vmem>>, vector<1x1x8x16xf32>
    %17 = vector.shape_cast %16 : vector<1x1x8x16xf32> to vector<8x16xf32>
    %18 = arith.maximumf %15, %17 : vector<8x16xf32>
    %c0_14 = arith.constant 0 : index
    %c0_15 = arith.constant 0 : index
    %c0_16 = arith.constant 0 : index
    %c0_17 = arith.constant 0 : index
    %19 = vector.load %arg3[%c0_14, %c0_15, %c0_16, %c0_17] : memref<1x4x8x16xf32, #tpu.memory_space<vmem>>, vector<1x1x8x16xf32>
    %20 = vector.shape_cast %19 : vector<1x1x8x16xf32> to vector<8x16xf32>
    %21 = arith.subf %20, %18 : vector<8x16xf32>
    %22 = math.exp %21 : vector<8x16xf32>
    %c0_i32 = arith.constant 0 : i32
    %23 = vector.broadcast %c0_i32 : i32 to vector<10x16xi32>
    %24 = arith.cmpi eq, %5, %23 : vector<10x16xi32>
    %c0_i32_18 = arith.constant 0 : i32
    %25 = vector.broadcast %c0_i32_18 : i32 to vector<10x16xi32>
    %26 = arith.cmpi eq, %6, %25 : vector<10x16xi32>
    %c0_i32_19 = arith.constant 0 : i32
    %27 = vector.broadcast %c0_i32_19 : i32 to vector<10x16xi32>
    %28 = arith.cmpi eq, %7, %27 : vector<10x16xi32>
    %cst = arith.constant 0.274068624 : f32
    %cst_20 = arith.constant 0.000000e+00 : f32
    %29 = vector.broadcast %cst : f32 to vector<10x16xf32>
    %30 = vector.broadcast %cst_20 : f32 to vector<10x16xf32>
    %31 = arith.select %24, %29, %30 : vector<10x16xi1>, vector<10x16xf32>
    %cst_21 = arith.constant 0.451862752 : f32
    %cst_22 = arith.constant 0.000000e+00 : f32
    %32 = vector.broadcast %cst_21 : f32 to vector<10x16xf32>
    %33 = vector.broadcast %cst_22 : f32 to vector<10x16xf32>
    %34 = arith.select %26, %32, %33 : vector<10x16xi1>, vector<10x16xf32>
    %35 = arith.addf %31, %34 : vector<10x16xf32>
    %cst_23 = arith.constant 0.274068624 : f32
    %cst_24 = arith.constant 0.000000e+00 : f32
    %36 = vector.broadcast %cst_23 : f32 to vector<10x16xf32>
    %37 = vector.broadcast %cst_24 : f32 to vector<10x16xf32>
    %38 = arith.select %28, %36, %37 : vector<10x16xi1>, vector<10x16xf32>
    %39 = arith.addf %35, %38 : vector<10x16xf32>
    %40 = vector.extract_strided_slice %39 {offsets = [0, 0], sizes = [8, 16], strides = [1, 1]} : vector<10x16xf32> to vector<8x16xf32>
    %41 = vector.extract_strided_slice %39 {offsets = [2, 0], sizes = [8, 16], strides = [1, 1]} : vector<10x16xf32> to vector<8x16xf32>
    %42 = arith.addf %40, %41 : vector<8x16xf32>
    %cst_25 = arith.constant 0.172192588 : f32
    %43 = vector.broadcast %cst_25 : f32 to vector<8x16xf32>
    %44 = arith.mulf %43, %42 : vector<8x16xf32>
    %45 = vector.extract_strided_slice %39 {offsets = [1, 0], sizes = [8, 16], strides = [1, 1]} : vector<10x16xf32> to vector<8x16xf32>
    %cst_26 = arith.constant 0.283897579 : f32
    %46 = vector.broadcast %cst_26 : f32 to vector<8x16xf32>
    %47 = arith.mulf %46, %45 : vector<8x16xf32>
    %48 = arith.addf %44, %47 : vector<8x16xf32>
    %49 = vector.extract_strided_slice %26 {offsets = [1, 0], sizes = [8, 16], strides = [1, 1]} : vector<10x16xi1> to vector<8x16xi1>
    %cst_27 = arith.constant 0.371717244 : f32
    %cst_28 = arith.constant 0.000000e+00 : f32
    %50 = vector.broadcast %cst_27 : f32 to vector<8x16xf32>
    %51 = vector.broadcast %cst_28 : f32 to vector<8x16xf32>
    %52 = arith.select %49, %50, %51 : vector<8x16xi1>, vector<8x16xf32>
    %53 = arith.addf %48, %52 : vector<8x16xf32>
    %54 = arith.mulf %53, %20 : vector<8x16xf32>
    %c0_29 = arith.constant 0 : index
    %c1_30 = arith.constant 1 : index
    %c0_31 = arith.constant 0 : index
    %c0_32 = arith.constant 0 : index
    %55 = vector.load %arg3[%c0_29, %c1_30, %c0_31, %c0_32] : memref<1x4x8x16xf32, #tpu.memory_space<vmem>>, vector<1x1x8x16xf32>
    %56 = vector.shape_cast %55 : vector<1x1x8x16xf32> to vector<8x16xf32>
    %57 = arith.subf %56, %18 : vector<8x16xf32>
    %58 = math.exp %57 : vector<8x16xf32>
    %59 = arith.addf %22, %58 : vector<8x16xf32>
    %c1_i32 = arith.constant 1 : i32
    %60 = vector.broadcast %c1_i32 : i32 to vector<10x16xi32>
    %61 = arith.cmpi eq, %5, %60 : vector<10x16xi32>
    %c1_i32_33 = arith.constant 1 : i32
    %62 = vector.broadcast %c1_i32_33 : i32 to vector<10x16xi32>
    %63 = arith.cmpi eq, %6, %62 : vector<10x16xi32>
    %c1_i32_34 = arith.constant 1 : i32
    %64 = vector.broadcast %c1_i32_34 : i32 to vector<10x16xi32>
    %65 = arith.cmpi eq, %7, %64 : vector<10x16xi32>
    %cst_35 = arith.constant 0.274068624 : f32
    %cst_36 = arith.constant 0.000000e+00 : f32
    %66 = vector.broadcast %cst_35 : f32 to vector<10x16xf32>
    %67 = vector.broadcast %cst_36 : f32 to vector<10x16xf32>
    %68 = arith.select %61, %66, %67 : vector<10x16xi1>, vector<10x16xf32>
    %cst_37 = arith.constant 0.451862752 : f32
    %cst_38 = arith.constant 0.000000e+00 : f32
    %69 = vector.broadcast %cst_37 : f32 to vector<10x16xf32>
    %70 = vector.broadcast %cst_38 : f32 to vector<10x16xf32>
    %71 = arith.select %63, %69, %70 : vector<10x16xi1>, vector<10x16xf32>
    %72 = arith.addf %68, %71 : vector<10x16xf32>
    %cst_39 = arith.constant 0.274068624 : f32
    %cst_40 = arith.constant 0.000000e+00 : f32
    %73 = vector.broadcast %cst_39 : f32 to vector<10x16xf32>
    %74 = vector.broadcast %cst_40 : f32 to vector<10x16xf32>
    %75 = arith.select %65, %73, %74 : vector<10x16xi1>, vector<10x16xf32>
    %76 = arith.addf %72, %75 : vector<10x16xf32>
    %77 = vector.extract_strided_slice %76 {offsets = [0, 0], sizes = [8, 16], strides = [1, 1]} : vector<10x16xf32> to vector<8x16xf32>
    %78 = vector.extract_strided_slice %76 {offsets = [2, 0], sizes = [8, 16], strides = [1, 1]} : vector<10x16xf32> to vector<8x16xf32>
    %79 = arith.addf %77, %78 : vector<8x16xf32>
    %cst_41 = arith.constant 0.172192588 : f32
    %80 = vector.broadcast %cst_41 : f32 to vector<8x16xf32>
    %81 = arith.mulf %80, %79 : vector<8x16xf32>
    %82 = vector.extract_strided_slice %76 {offsets = [1, 0], sizes = [8, 16], strides = [1, 1]} : vector<10x16xf32> to vector<8x16xf32>
    %cst_42 = arith.constant 0.283897579 : f32
    %83 = vector.broadcast %cst_42 : f32 to vector<8x16xf32>
    %84 = arith.mulf %83, %82 : vector<8x16xf32>
    %85 = arith.addf %81, %84 : vector<8x16xf32>
    %86 = vector.extract_strided_slice %63 {offsets = [1, 0], sizes = [8, 16], strides = [1, 1]} : vector<10x16xi1> to vector<8x16xi1>
    %cst_43 = arith.constant 0.371717244 : f32
    %cst_44 = arith.constant 0.000000e+00 : f32
    %87 = vector.broadcast %cst_43 : f32 to vector<8x16xf32>
    %88 = vector.broadcast %cst_44 : f32 to vector<8x16xf32>
    %89 = arith.select %86, %87, %88 : vector<8x16xi1>, vector<8x16xf32>
    %90 = arith.addf %85, %89 : vector<8x16xf32>
    %91 = arith.mulf %90, %56 : vector<8x16xf32>
    %92 = arith.addf %54, %91 : vector<8x16xf32>
    %c0_45 = arith.constant 0 : index
    %c2_46 = arith.constant 2 : index
    %c0_47 = arith.constant 0 : index
    %c0_48 = arith.constant 0 : index
    %93 = vector.load %arg3[%c0_45, %c2_46, %c0_47, %c0_48] : memref<1x4x8x16xf32, #tpu.memory_space<vmem>>, vector<1x1x8x16xf32>
    %94 = vector.shape_cast %93 : vector<1x1x8x16xf32> to vector<8x16xf32>
    %95 = arith.subf %94, %18 : vector<8x16xf32>
    %96 = math.exp %95 : vector<8x16xf32>
    %97 = arith.addf %59, %96 : vector<8x16xf32>
    %c2_i32 = arith.constant 2 : i32
    %98 = vector.broadcast %c2_i32 : i32 to vector<10x16xi32>
    %99 = arith.cmpi eq, %5, %98 : vector<10x16xi32>
    %c2_i32_49 = arith.constant 2 : i32
    %100 = vector.broadcast %c2_i32_49 : i32 to vector<10x16xi32>
    %101 = arith.cmpi eq, %6, %100 : vector<10x16xi32>
    %c2_i32_50 = arith.constant 2 : i32
    %102 = vector.broadcast %c2_i32_50 : i32 to vector<10x16xi32>
    %103 = arith.cmpi eq, %7, %102 : vector<10x16xi32>
    %cst_51 = arith.constant 0.274068624 : f32
    %cst_52 = arith.constant 0.000000e+00 : f32
    %104 = vector.broadcast %cst_51 : f32 to vector<10x16xf32>
    %105 = vector.broadcast %cst_52 : f32 to vector<10x16xf32>
    %106 = arith.select %99, %104, %105 : vector<10x16xi1>, vector<10x16xf32>
    %cst_53 = arith.constant 0.451862752 : f32
    %cst_54 = arith.constant 0.000000e+00 : f32
    %107 = vector.broadcast %cst_53 : f32 to vector<10x16xf32>
    %108 = vector.broadcast %cst_54 : f32 to vector<10x16xf32>
    %109 = arith.select %101, %107, %108 : vector<10x16xi1>, vector<10x16xf32>
    %110 = arith.addf %106, %109 : vector<10x16xf32>
    %cst_55 = arith.constant 0.274068624 : f32
    %cst_56 = arith.constant 0.000000e+00 : f32
    %111 = vector.broadcast %cst_55 : f32 to vector<10x16xf32>
    %112 = vector.broadcast %cst_56 : f32 to vector<10x16xf32>
    %113 = arith.select %103, %111, %112 : vector<10x16xi1>, vector<10x16xf32>
    %114 = arith.addf %110, %113 : vector<10x16xf32>
    %115 = vector.extract_strided_slice %114 {offsets = [0, 0], sizes = [8, 16], strides = [1, 1]} : vector<10x16xf32> to vector<8x16xf32>
    %116 = vector.extract_strided_slice %114 {offsets = [2, 0], sizes = [8, 16], strides = [1, 1]} : vector<10x16xf32> to vector<8x16xf32>
    %117 = arith.addf %115, %116 : vector<8x16xf32>
    %cst_57 = arith.constant 0.172192588 : f32
    %118 = vector.broadcast %cst_57 : f32 to vector<8x16xf32>
    %119 = arith.mulf %118, %117 : vector<8x16xf32>
    %120 = vector.extract_strided_slice %114 {offsets = [1, 0], sizes = [8, 16], strides = [1, 1]} : vector<10x16xf32> to vector<8x16xf32>
    %cst_58 = arith.constant 0.283897579 : f32
    %121 = vector.broadcast %cst_58 : f32 to vector<8x16xf32>
    %122 = arith.mulf %121, %120 : vector<8x16xf32>
    %123 = arith.addf %119, %122 : vector<8x16xf32>
    %124 = vector.extract_strided_slice %101 {offsets = [1, 0], sizes = [8, 16], strides = [1, 1]} : vector<10x16xi1> to vector<8x16xi1>
    %cst_59 = arith.constant 0.371717244 : f32
    %cst_60 = arith.constant 0.000000e+00 : f32
    %125 = vector.broadcast %cst_59 : f32 to vector<8x16xf32>
    %126 = vector.broadcast %cst_60 : f32 to vector<8x16xf32>
    %127 = arith.select %124, %125, %126 : vector<8x16xi1>, vector<8x16xf32>
    %128 = arith.addf %123, %127 : vector<8x16xf32>
    %129 = arith.mulf %128, %94 : vector<8x16xf32>
    %130 = arith.addf %92, %129 : vector<8x16xf32>
    %c0_61 = arith.constant 0 : index
    %c3_62 = arith.constant 3 : index
    %c0_63 = arith.constant 0 : index
    %c0_64 = arith.constant 0 : index
    %131 = vector.load %arg3[%c0_61, %c3_62, %c0_63, %c0_64] : memref<1x4x8x16xf32, #tpu.memory_space<vmem>>, vector<1x1x8x16xf32>
    %132 = vector.shape_cast %131 : vector<1x1x8x16xf32> to vector<8x16xf32>
    %133 = arith.subf %132, %18 : vector<8x16xf32>
    %134 = math.exp %133 : vector<8x16xf32>
    %135 = arith.addf %97, %134 : vector<8x16xf32>
    %c3_i32 = arith.constant 3 : i32
    %136 = vector.broadcast %c3_i32 : i32 to vector<10x16xi32>
    %137 = arith.cmpi eq, %5, %136 : vector<10x16xi32>
    %c3_i32_65 = arith.constant 3 : i32
    %138 = vector.broadcast %c3_i32_65 : i32 to vector<10x16xi32>
    %139 = arith.cmpi eq, %6, %138 : vector<10x16xi32>
    %c3_i32_66 = arith.constant 3 : i32
    %140 = vector.broadcast %c3_i32_66 : i32 to vector<10x16xi32>
    %141 = arith.cmpi eq, %7, %140 : vector<10x16xi32>
    %cst_67 = arith.constant 0.274068624 : f32
    %cst_68 = arith.constant 0.000000e+00 : f32
    %142 = vector.broadcast %cst_67 : f32 to vector<10x16xf32>
    %143 = vector.broadcast %cst_68 : f32 to vector<10x16xf32>
    %144 = arith.select %137, %142, %143 : vector<10x16xi1>, vector<10x16xf32>
    %cst_69 = arith.constant 0.451862752 : f32
    %cst_70 = arith.constant 0.000000e+00 : f32
    %145 = vector.broadcast %cst_69 : f32 to vector<10x16xf32>
    %146 = vector.broadcast %cst_70 : f32 to vector<10x16xf32>
    %147 = arith.select %139, %145, %146 : vector<10x16xi1>, vector<10x16xf32>
    %148 = arith.addf %144, %147 : vector<10x16xf32>
    %cst_71 = arith.constant 0.274068624 : f32
    %cst_72 = arith.constant 0.000000e+00 : f32
    %149 = vector.broadcast %cst_71 : f32 to vector<10x16xf32>
    %150 = vector.broadcast %cst_72 : f32 to vector<10x16xf32>
    %151 = arith.select %141, %149, %150 : vector<10x16xi1>, vector<10x16xf32>
    %152 = arith.addf %148, %151 : vector<10x16xf32>
    %153 = vector.extract_strided_slice %152 {offsets = [0, 0], sizes = [8, 16], strides = [1, 1]} : vector<10x16xf32> to vector<8x16xf32>
    %154 = vector.extract_strided_slice %152 {offsets = [2, 0], sizes = [8, 16], strides = [1, 1]} : vector<10x16xf32> to vector<8x16xf32>
    %155 = arith.addf %153, %154 : vector<8x16xf32>
    %cst_73 = arith.constant 0.172192588 : f32
    %156 = vector.broadcast %cst_73 : f32 to vector<8x16xf32>
    %157 = arith.mulf %156, %155 : vector<8x16xf32>
    %158 = vector.extract_strided_slice %152 {offsets = [1, 0], sizes = [8, 16], strides = [1, 1]} : vector<10x16xf32> to vector<8x16xf32>
    %cst_74 = arith.constant 0.283897579 : f32
    %159 = vector.broadcast %cst_74 : f32 to vector<8x16xf32>
    %160 = arith.mulf %159, %158 : vector<8x16xf32>
    %161 = arith.addf %157, %160 : vector<8x16xf32>
    %162 = vector.extract_strided_slice %139 {offsets = [1, 0], sizes = [8, 16], strides = [1, 1]} : vector<10x16xi1> to vector<8x16xi1>
    %cst_75 = arith.constant 0.371717244 : f32
    %cst_76 = arith.constant 0.000000e+00 : f32
    %163 = vector.broadcast %cst_75 : f32 to vector<8x16xf32>
    %164 = vector.broadcast %cst_76 : f32 to vector<8x16xf32>
    %165 = arith.select %162, %163, %164 : vector<8x16xi1>, vector<8x16xf32>
    %166 = arith.addf %161, %165 : vector<8x16xf32>
    %167 = arith.mulf %166, %132 : vector<8x16xf32>
    %168 = arith.addf %130, %167 : vector<8x16xf32>
    %169 = math.log %135 : vector<8x16xf32>
    %170 = arith.addf %18, %169 : vector<8x16xf32>
    %cst_77 = arith.constant 0.000000e+00 : f32
    %171 = vector.broadcast %cst_77 : f32 to vector<1x1x1x1xf32>
    %172 = arith.subf %170, %168 : vector<8x16xf32>
    %173 = vector.shape_cast %172 : vector<8x16xf32> to vector<1x8x16xf32>
    %cst_78 = arith.constant dense<0.000000e+00> : vector<1xf32>
    %174 = vector.multi_reduction <add>, %173, %cst_78 [1, 2] : vector<1x8x16xf32> to vector<1xf32>
    %175 = vector.shape_cast %174 : vector<1xf32> to vector<1x1x1xf32>
    %176 = vector.extract %175[0, 0, 0] : f32 from vector<1x1x1xf32>
    %177 = vector.broadcast %176 : f32 to vector<1x1x1x1xf32>
    %178 = arith.addf %171, %177 : vector<1x1x1x1xf32>
    %c0_79 = arith.constant 0 : index
    %c0_80 = arith.constant 0 : index
    %c0_81 = arith.constant 0 : index
    %c0_82 = arith.constant 0 : index
    %179 = vector.load %arg4[%c0_79, %c0_80, %c0_81, %c0_82] : memref<1x1x1x1xf32, #tpu.memory_space<vmem>>, vector<1x1x1x1xf32>
    tpu.vector_store %arg4[%c0_79, %c0_80, %c0_81, %c0_82], %178 {strides = array<i32>} : memref<1x1x1x1xf32, #tpu.memory_space<vmem>>, vector<1x1x1x1xf32>,
    return
  }
  func.func @transform_0(%arg0: i32, %arg1: i32) -> (i32, i32, i32) {
    %c0_i32 = arith.constant 0 : i32
    %c0_i32_0 = arith.constant 0 : i32
    %c0_i32_1 = arith.constant 0 : i32
    return %arg0, %c0_i32, %c0_i32_0 : i32, i32, i32
  }
  func.func @transform_1(%arg0: i32, %arg1: i32) -> (i32, i32, i32, i32) {
    %c0_i32 = arith.constant 0 : i32
    %c0_i32_0 = arith.constant 0 : i32
    %c0_i32_1 = arith.constant 0 : i32
    return %arg0, %c0_i32, %arg1, %c0_i32_0 : i32, i32, i32, i32
  }
  func.func @transform_2(%arg0: i32, %arg1: i32) -> (i32, i32, i32, i32) {
    %c0_i32 = arith.constant 0 : i32
    %c0_i32_0 = arith.constant 0 : i32
    %c0_i32_1 = arith.constant 0 : i32
    return %arg0, %arg1, %c0_i32, %c0_i32_0 : i32, i32, i32, i32
  }
}

</mosaic_0001>

<bundles_post_ra>
// kernel: tpu_custom_call.1
= control target key start
LH: loop header
LB: loop body
LE: loop exit
PB: predicated region body
PF: predicated region fallthrough
CT: control target
= control target key end

     0   :  { %7 = vsyncpa [#allocation3], 0  ;;  %s1089_s0 = inlined_call_operand.vmem [shape: s32[2,18,18], index: 0, kind: input, shape index: {}]   ;;  %s1090_s1 = inlined_call_operand.hbm [shape: f32[2,4,16,16], index: 1, kind: input, shape index: {}]   ;;  %s1091_s2 = inlined_call_operand.vmem [shape: f32[2,2,1,1], index: 2, kind: output, shape index: {}]  }
   0x1   :  { %9 = vsyncpa [#allocation3 + $0x1], 0  ;;  %s807_s9 = smov 0   ;;  %s809_s10 = smov 0  }
   0x2   :  { %s811_s11 = smov 0   ;;  %s813_s12 = smov 0  }
   0x3   :  { %s815_s13 = smov 0   ;;  %s817_s14 = smov 0  }
   0x4   :  { %s819_s15 = smov 0   ;;  %s821_s16 = smov 0  }
   0x5 LB: > { %s580_s17 = sadd.s32 4294967295, %s783_s16   ;;  %s24_s18 = sadd.s32 1, %s775_s14  ;;  %s783_s16 = sphi %s821_s16, %s15_s16   ;;  %s779_s15 = sphi %s819_s15, %s1102_s15   ;;  %s775_s14 = sphi %s817_s14, %s1101_s14   ;;  %s771_s13 = sphi %s815_s13, %s1100_s13   ;;  %s767_s12 = sphi %s813_s12, %s1099_s12   ;;  %s763_s11 = sphi %s811_s11, %s1098_s11   ;;  %s759_s10 = sphi %s809_s10, %s1097_s10   ;;  %s755_s9 = sphi %s807_s9, %s1096_s9  }
   0x6   : > { %p25_p0 = scmp.ge.s32.totalorder %s24_s18, 2  ;;  %s27_s19 = sadd.s32 1, %s779_s15 }
   0x7   : > { %s62_s20 = sadd.s32 1, %s763_s11  ;;  %p69_p1 = scmp.ne.s32.totalorder %s763_s11, %s759_s10 }
   0x8   : > { %s1104_s18 = smov (%p25_p0, %s24_s18), 0  ;;  %s1106_s19 = smov (!%p25_p0, %s27_s19), %s779_s15 }
   0x9   : > { %s58_s21 = ssub.s32 %s775_s14, %s1104_s18  ;;  %p70_p2 = scmp.eq.s32.totalorder %s783_s16, 0 }
   0xa   : > { %p29_p3 = scmp.ge.s32.totalorder %s1106_s19, 2  ;;  %p75_p4 = scmp.ne.s32.totalorder %s759_s10, %s755_s9 }
   0xb   : > { %p858_p5 = por %p70_p2, %p69_p1  ;;  %p76_p6 = scmp.eq.s32.totalorder %s580_s17, 0 }
   0xc   : > { %s1108_s19 = smov (%p29_p3, %s1106_s19), 0  ;;  %p606_p8 = scmp.lt.s32.totalorder %s783_s16, 4 }
   0xd   : > { %p864_p7 = por %p76_p6, %p75_p4  ;;  %s57_s24 = ssub.s32 %s779_s15, %s1108_s19 }
   0xe   : > { %s59_s25 = sor.u32 %s58_s21, %s57_s24  ;;  %s135_s26 = sand.u32 1, %s763_s11  }
   0xf   : > { %p60_p9 = scmp.eq.s32.totalorder %s59_s25, 0  ;;  %s584_s27 = sshll.u32 %s135_s26, 5 }
  0x10   : > { %s585_s28 = sshll.u32 %s779_s15, 3  ;;  %s139_s4 = scalar_lea.vmem [#allocation2], %s584_s27 }
  0x11   : > { %s874_s29 = scalar_select %p60_p9, %s763_s11, %s62_s20  }
  0x12   : > { %s144_s30 = sadd.s32 %s775_s14, %s585_s28  ;;  %s147_s5 = sshll.u32 %s139_s4, 4  ;;  %s882_s5 = int_to_ptr.vmem [resolvable:$true] %s147_s5 }
  0x13   : > { %s586_s3 = sshll.u32 %s144_s30, 7  ;;  %p888_p10 = pnand %p606_p8, %p858_p5 }
  0x14   : > { %s880_s8 = scalar_lea.hbm %s1090_s1, %s586_s3  ;;  %s893_s17 = scalar_lea.sflag [#allocation3], %s135_s26 }
  0x15   : > { %s687_s20 = scalar_lea.hbm %s880_s8, 512  ;;  %p689_p13 = pneg %p888_p10 }
  0x16   : > { %p688_p12 = scmp.ne.s32.totalorder %s880_s8, %s687_s20  ;;  %s692_s24 = scalar_lea.hbm %s1090_s1, 2048 }
  0x17   : > { %p693_p2 = scmp.lt.u32.totalorder %s880_s8, %s1090_s1  ;;  %p694_p3 = scmp.lt.u32.totalorder %s692_s24, %s687_s20 }
  0x18   : > { %p690_p0 = pnand %p689_p13, %p688_p12  ;;  %p696_p5 = scmp.lt.u32.totalorder %s687_s20, %s880_s8 }
  0x19   : > { %p695_p4 = por %p694_p3, %p693_p2 }
  0x1a   : > { %p691_p1 = pneg %p690_p0 }
  0x1b   : > { %p697_p6 = por %p696_p5, %p695_p4 }
  0x1d   : > { %p698_p8 = pnand %p697_p6, %p691_p1 }
  0x1f   : > { %701 = shalt.err (!%p698_p8)
}
  0x20   : > { %s702_s26 = scalar_lea.vmem %s882_s5, 512  ;;  %s785_s28 = smov [#allocation2]  }
  0x21   : > { %p703_p9 = scmp.ne.s32.totalorder %s882_s5, %s702_s26  ;;  %s707_s30 = sshll.u32 %s785_s28, 4  ;;  %s708_s30 = int_to_ptr.vmem [resolvable:$false] %s707_s30 }
  0x22   : > { %s709_s3 = scalar_lea.vmem %s708_s30, 1024  ;;  %p710_p11 = scmp.lt.s32.totalorder %s882_s5, %s708_s30 }
  0x23   : > { %p705_p12 = pnand %p703_p9, %p689_p13  ;;  %p711_p2 = scmp.lt.s32.totalorder %s709_s3, %s702_s26 }
  0x25   : > { %p706_p0 = pneg %p705_p12  ;;  %p712_p3 = por %p711_p2, %p710_p11 }
  0x27   : > { %p713_p4 = pnand %p712_p3, %p706_p0 }
  0x29   : > { %716 = shalt.err (!%p713_p4)
}
  0x2a   : > { %s786_s4 = smov 256   ;;  %s787_s6 = smov 128  }
  0x2b   : > { %s788_s7 = smov 8   ;;  %p155_p13 = scmp.lt.s32.totalorder %s783_s16, 5 }
  0x2c   : > { %605 = dma.hbm_to_vmem [thread:$0]  (!%p888_p10), %s880_s8, 512, %s882_s5, %s893_s17, %s786_s4, %s787_s6, %s788_s7  }
  0x2d   : > { %p1095_p1 = scmp.ge.s32.totalorder %s783_s16, 1 }
  0x2f   : > { %p156_p5 = pnand %p1095_p1, %p155_p13 }
  0x30   : > { %s161_s20 = sand.u32 (!%p156_p5), 1, %s759_s10  }
  0x31   : > { %159 = sbr.rel (%p156_p5) target bundleno = 437 (0x1b5), region = 28  ;;  %s588_s21 = sshll.u32 (!%p156_p5), %s161_s20, 5 }
  0x32   : > { %s162_s22 = scalar_lea.sflag (!%p156_p5), [#allocation3], %s161_s20  ;;  %s925_s24 = scalar_lea.vmem (!%p156_p5), [#allocation2], %s588_s21 }
  0x38   : > { %750 = dma.done.wait (%p864_p7), %s162_s22, 512  }
  0x39   : > { %752 = vsyncadd (%p864_p7), %s162_s22, 4294966784  ;;  %p193_p10 = scmp.lt.s32.totalorder %s771_s13, 1  ;;  %s591_s8 = sshll.u32 %s767_s12, 3  ;;  %v789_v2 = vmov 0.0   ;;  %vm261_vm8 = vcmask 1046528   ;;  %v1013_v39 = vld [vmem:[%s925_s24 + $0x8] sm:$0xff] }
  0x3a   : > { %s790_s23 = smov 127   ;;  %s791_s26 = smov 126   ;;  %v1016_v40 = vld [vmem:[%s925_s24] sm:$0xff]  ;;  %v1021_v42 = vld [vmem:[%s925_s24 + $0x10] sm:$0xff]  ;;  %v1025_v44 = vld [vmem:[%s925_s24 + $0x18] sm:$0xff]  ;;  %vm250_vm9 = vcmask 1045504  }
  0x3b   : > { %s1110_s13 = smov (!%p193_p10, %s771_s13), 1  ;;  %v212_v41 = vmax.f32 %v1016_v40, %v1013_v39  ;;  %vm463_vm10 = vcmask 130048   ;;  %p200_p7 = scmp.lt.s32.totalorder %s767_s12, 1  ;;  %vm476_vm11 = vcmask 0  }
  0x3c   : > { %s597_s5 = smul.u32 24, %s1110_s13  ;;  %s590_s28 = sshll.u32 %s1110_s13, 1 }
  0x3d   : > { %v215_v43 = vmax.f32 %v212_v41, %v1021_v42  ;;  %s1112_s12 = smov (!%p200_p7, %s767_s12), 1 }
  0x3e   : > { %s197_s25 = scalar_lea.vmem %s1089_s0, %s597_s5  ;;  %s203_s30 = sadd.s32 %s590_s28, %s1112_s12 }
  0x3f   : > { %s206_s27 = scalar_lea.vmem %s197_s25, %s591_s8  ;;  %v1028_v45 = vmax.f32 %v215_v43, %v1025_v44  ;;  %s204_s6 = scalar_lea.vmem %s1091_s2, %s203_s30 }
  0x40   : > { %v207_v0 = vld [vmem:[%s206_s27] sm:$0xff]  ;;  %v208_v1 = vld [vmem:[%s206_s27 + $0x8] sm:$0x3] }
  0x41   : > { %vm283_vm0 = vcmp.eq.s32.totalorder %v207_v0, 1  ;;  %vm222_vm1 = vcmp.eq.s32.totalorder %v207_v0, 0  ;;  %vm284_vm2 = vcmp.eq.s32.totalorder %v208_v1, 1  ;;  %vm223_vm3 = vcmp.eq.s32.totalorder %v208_v1, 0 }
  0x42   : > { %v287_v3 = vsel %vm283_vm0, 0.45186275, %v789_v2  ;;  %v226_v4 = vsel %vm222_vm1, 0.45186275, %v789_v2  ;;  %v288_v5 = vsel %vm284_vm2, 0.45186275, %v789_v2  ;;  %v219_v46 = vsub.f32 %v1016_v40, %v1028_v45 }
  0x43   : > { %291 = vrot.lane.b32.xlu1 %v287_v3, %s790_s23  ;;  %230 = vrot.lane.b32.xlu0 %v226_v4, %s790_s23  ;;  %v227_v6 = vsel %vm223_vm3, 0.45186275, %v789_v2  ;;  %v949_v7 = vsel %vm223_vm3, 0.27406862, %v789_v2  ;;  %v952_v8 = vsel %vm222_vm1, 0.27406862, %v789_v2  ;;  %v279_v47 = vsub.f32 %v1013_v39, %v1028_v45 }
  0x44   : > { %v959_v9 = vsel %vm284_vm2, 0.27406862, %v789_v2  ;;  %v962_v10 = vsel %vm283_vm0, 0.27406862, %v789_v2  ;;  %vm344_vm4 = vcmp.eq.s32.totalorder %v208_v1, 2  ;;  %vm343_vm5 = vcmp.eq.s32.totalorder %v207_v0, 2 }
  0x45   : > { %v348_v11 = vsel %vm344_vm4, 0.45186275, %v789_v2  ;;  %v347_v12 = vsel %vm343_vm5, 0.45186275, %v789_v2  ;;  %v973_v13 = vsel %vm344_vm4, 0.27406862, %v789_v2  ;;  %v339_v50 = vsub.f32 %v1021_v42, %v1028_v45 }
  0x46   : > { %v976_v14 = vsel %vm343_vm5, 0.27406862, %v789_v2  ;;  %vm404_vm6 = vcmp.eq.s32.totalorder %v208_v1, 3  ;;  %vm403_vm7 = vcmp.eq.s32.totalorder %v207_v0, 3  ;;  %v326_v15 = vsel %vm283_vm0, 0.37171724, %v789_v2 }
  0x47   : > { %293 = vrot.lane.b32.xlu1 %v288_v5, %s790_s23  ;;  %232 = vrot.lane.b32.xlu0 %v227_v6, %s790_s23  ;;  %v267_v16 = vsel %vm222_vm1, 0.37171724, %v789_v2  ;;  %v408_v17 = vsel %vm404_vm6, 0.45186275, %v789_v2  ;;  %v407_v18 = vsel %vm403_vm7, 0.45186275, %v789_v2  ;;  %v399_v52 = vsub.f32 %v1025_v44, %v1028_v45 }
  0x48   : > { %v327_v19 = vsel %vm284_vm2, 0.37171724, %v789_v2  ;;  %v268_v20 = vsel %vm223_vm3, 0.37171724, %v789_v2  ;;  %v330_v21 = vrot.slane %v326_v15, 1  ;;  %v271_v22 = vrot.slane %v267_v16, 1 }
  0x49   : > { %v387_v23 = vsel %vm344_vm4, 0.37171724, %v789_v2  ;;  %v386_v24 = vsel %vm343_vm5, 0.37171724, %v789_v2  ;;  %v993_v25 = vsel %vm404_vm6, 0.27406862, %v789_v2 }
  0x4a   : > { %v996_v26 = vsel %vm403_vm7, 0.27406862, %v789_v2  ;;  %v331_v27 = vrot.slane %v327_v19, 1  ;;  %v272_v28 = vrot.slane %v268_v20, 1  ;;  %v447_v29 = vsel %vm404_vm6, 0.37171724, %v789_v2 }
  0x4b   : > { %242 = vrot.lane.b32.xlu1 %v949_v7, %s791_s26  ;;  %240 = vrot.lane.b32.xlu0 %v952_v8, %s791_s26  ;;  %v446_v30 = vsel %vm403_vm7, 0.37171724, %v789_v2  ;;  %v390_v31 = vrot.slane %v386_v24, 1  ;;  %v391_v32 = vrot.slane %v387_v23, 1  ;;  %v451_v36 = vrot.slane %v447_v29, 1 }
  0x4c   : > { %v332_v33 = vsel %vm261_vm8, %v330_v21, %v331_v27  ;;  %v273_v34 = vsel %vm261_vm8, %v271_v22, %v272_v28  ;;  %v450_v35 = vrot.slane %v446_v30, 1  ;;  %v220_v48 = vmul.f32 1.442695, %v219_v46 }
  0x4d   : > { %v392_v37 = vsel %vm261_vm8, %v390_v31, %v391_v32  ;;  %v280_v49 = vmul.f32 1.442695, %v279_v47  ;;  %v340_v51 = vmul.f32 1.442695, %v339_v50  ;;  %v400_v55 = vmul.f32 1.442695, %v399_v52 }
  0x4e   : > { %v452_v38 = vsel %vm261_vm8, %v450_v35, %v451_v36  ;;  %677 = vpow2.f32 %v220_v48 }
  0x4f   : > { %303 = vrot.lane.b32.xlu1 %v959_v9, %s791_s26  ;;  %301 = vrot.lane.b32.xlu0 %v962_v10, %s791_s26  ;;  %679 = vpow2.f32 %v280_v49 }
  0x50   : > { %681 = vpow2.f32 %v340_v51 }
  0x51   : > { %683 = vpow2.f32 %v400_v55 }
  0x53   : > { %353 = vrot.lane.b32.xlu1 %v348_v11, %s790_s23  ;;  %351 = vrot.lane.b32.xlu0 %v347_v12, %s790_s23 }
  0x57   : > { %363 = vrot.lane.b32.xlu1 %v973_v13, %s791_s26  ;;  %361 = vrot.lane.b32.xlu0 %v976_v14, %s791_s26 }
  0x58   : > { %v678_v58 = vpop.eup %677 }
  0x59   : > { %v680_v63 = vpop.eup %679 }
  0x5a   : > { %v282_v6 = vadd.f32 %v680_v63, %v678_v58  ;;  %v682_v11 = vpop.eup %681 }
  0x5b   : > { %413 = vrot.lane.b32.xlu1 %v408_v17, %s790_s23  ;;  %411 = vrot.lane.b32.xlu0 %v407_v18, %s790_s23  ;;  %v684_v21 = vpop.eup %683 }
  0x5c   : > { %v342_v20 = vadd.f32 %v682_v11, %v282_v6 }
  0x5e   : > { %v402_v31 = vadd.f32 %v684_v21, %v342_v20 }
  0x5f   : > { %423 = vrot.lane.b32.xlu1 %v993_v25, %s791_s26  ;;  %421 = vrot.lane.b32.xlu0 %v996_v26, %s791_s26 }
  0x60   : > { %685 = vlog2.f32 %v402_v31 }
  0x63   : > { %333 = vrot.lane.b32.xlu1 %v332_v33, %s790_s23  ;;  %274 = vrot.lane.b32.xlu0 %v273_v34, %s790_s23 }
  0x67   : > { %393 = vrot.lane.b32.xlu0 %v392_v37, %s790_s23  ;;  %453 = vrot.lane.b32.xlu1 %v452_v38, %s790_s23 }
  0xb5   : > { %v292_v53 = vpop.permute.xlu1 %291  ;;  %v231_v54 = vpop.permute.xlu0 %230 }
  0xb6   : > { %v236_v59 = vadd.f32 %v231_v54, %v952_v8  ;;  %v297_v2 = vadd.f32 %v292_v53, %v962_v10 }
  0xb9   : > { %v294_v56 = vpop.permute.xlu1 %293  ;;  %v233_v57 = vpop.permute.xlu0 %232 }
  0xba   : > { %v237_v60 = vadd.f32 %v233_v57, %v949_v7  ;;  %v298_v3 = vadd.f32 %v294_v56, %v959_v9 }
  0xbd   : > { %v243_v61 = vpop.permute.xlu1 %242  ;;  %v241_v62 = vpop.permute.xlu0 %240 }
  0xbe   : > { %v247_v0 = vadd.f32 %v243_v61, %v237_v60  ;;  %v246_v1 = vadd.f32 %v241_v62, %v236_v59 }
  0xc0   : > { %v252_v16 = vrot.slane %v247_v0, 2  ;;  %v251_v17 = vrot.slane %v246_v1, 2  ;;  %v258_v24 = vmul.f32 0.28389758, %v247_v0  ;;  %v257_v27 = vmul.f32 0.28389758, %v246_v1 }
  0xc1   : > { %v304_v4 = vpop.permute.xlu1 %303  ;;  %v302_v5 = vpop.permute.xlu0 %301 }
  0xc2   : > { %v308_v12 = vadd.f32 %v304_v4, %v298_v3  ;;  %v307_v15 = vadd.f32 %v302_v5, %v297_v2  ;;  %v253_v22 = vsel %vm250_vm9, %v251_v17, %v252_v16  ;;  %v263_v41 = vrot.slane %v258_v24, 1 }
  0xc3   : > { %v255_v35 = vadd.f32 %v253_v22, %v246_v1  ;;  %v262_v43 = vrot.slane %v257_v27, 1 }
  0xc4   : > { %v312_v8 = vrot.slane %v308_v12, 2  ;;  %v311_v18 = vrot.slane %v307_v15, 2  ;;  %v318_v28 = vmul.f32 0.28389758, %v308_v12  ;;  %v317_v32 = vmul.f32 0.28389758, %v307_v15 }
  0xc5   : > { %v354_v7 = vpop.permute.xlu1 %353  ;;  %v352_v19 = vpop.permute.xlu0 %351  ;;  %v256_v48 = vmul.f32 0.17219259, %v255_v35  ;;  %v264_v58 = vsel %vm261_vm8, %v262_v43, %v263_v41 }
  0xc6   : > { %v358_v10 = vadd.f32 %v354_v7, %v973_v13  ;;  %v357_v9 = vadd.f32 %v352_v19, %v976_v14  ;;  %v313_v23 = vsel %vm250_vm9, %v311_v18, %v312_v8  ;;  %v322_v14 = vrot.slane %v318_v28, 1  ;;  %v686_v18 = vpop.eup %685 }
  0xc7   : > { %v315_v36 = vadd.f32 %v313_v23, %v307_v15  ;;  %v321_v47 = vrot.slane %v317_v32, 1  ;;  %v266_v62 = vadd.f32 %v264_v58, %v256_v48 }
  0xc9   : > { %v364_v29 = vpop.permute.xlu1 %363  ;;  %v362_v30 = vpop.permute.xlu0 %361  ;;  %v316_v51 = vmul.f32 0.17219259, %v315_v36  ;;  %v323_v61 = vsel %vm261_vm8, %v321_v47, %v322_v14 }
  0xca   : > { %v368_v33 = vadd.f32 %v364_v29, %v358_v10  ;;  %v367_v34 = vadd.f32 %v362_v30, %v357_v9  ;;  %v460_v30 = vmul.f32 0.6931472, %v686_v18 }
  0xcb   : > { %v325_v1 = vadd.f32 %v323_v61, %v316_v51 }
  0xcc   : > { %v372_v37 = vrot.slane %v368_v33, 2  ;;  %v371_v38 = vrot.slane %v367_v34, 2  ;;  %v378_v49 = vmul.f32 0.28389758, %v368_v33  ;;  %v377_v50 = vmul.f32 0.28389758, %v367_v34 }
  0xcd   : > { %v414_v13 = vpop.permute.xlu1 %413  ;;  %v412_v46 = vpop.permute.xlu0 %411 }
  0xce   : > { %v373_v52 = vsel %vm250_vm9, %v371_v38, %v372_v37  ;;  %v418_v53 = vadd.f32 %v414_v13, %v993_v25  ;;  %v417_v54 = vadd.f32 %v412_v46, %v996_v26  ;;  %v382_v63 = vrot.slane %v378_v49, 1 }
  0xcf   : > { %v375_v55 = vadd.f32 %v373_v52, %v367_v34  ;;  %v381_v0 = vrot.slane %v377_v50, 1 }
  0xd1   : > { %v424_v56 = vpop.permute.xlu1 %423  ;;  %v422_v57 = vpop.permute.xlu0 %421  ;;  %v376_v2 = vmul.f32 0.17219259, %v375_v55  ;;  %v383_v17 = vsel %vm261_vm8, %v381_v0, %v382_v63 }
  0xd2   : > { %v428_v59 = vadd.f32 %v424_v56, %v418_v53  ;;  %v427_v60 = vadd.f32 %v422_v57, %v417_v54 }
  0xd3   : > { %v385_v20 = vadd.f32 %v383_v17, %v376_v2 }
  0xd4   : > { %v432_v3 = vrot.slane %v428_v59, 2  ;;  %v438_v4 = vmul.f32 0.28389758, %v428_v59  ;;  %v431_v5 = vrot.slane %v427_v60, 2  ;;  %v437_v25 = vmul.f32 0.28389758, %v427_v60 }
  0xd5   : > { %v334_v6 = vpop.permute.xlu1 %333  ;;  %v275_v26 = vpop.permute.xlu0 %274 }
  0xd6   : > { %v336_v11 = vadd.f32 %v334_v6, %v325_v1  ;;  %v277_v12 = vadd.f32 %v275_v26, %v266_v62  ;;  %v442_v15 = vrot.slane %v438_v4, 1  ;;  %v441_v16 = vrot.slane %v437_v25, 1 }
  0xd7   : > { %v433_v8 = vsel %vm250_vm9, %v431_v5, %v432_v3 }
  0xd8   : > { %v337_v7 = vmul.f32 %v1013_v39, %v336_v11  ;;  %v278_v19 = vmul.f32 %v277_v12, %v1016_v40  ;;  %v435_v21 = vadd.f32 %v433_v8, %v427_v60  ;;  %v443_v24 = vsel %vm261_vm8, %v441_v16, %v442_v15 }
  0xd9   : > { %v394_v22 = vpop.permute.xlu0 %393  ;;  %v454_v23 = vpop.permute.xlu1 %453  ;;  %v461_v40 = vadd.f32 %v460_v30, %v1028_v45 }
  0xda   : > { %v396_v10 = vadd.f32 %v394_v22, %v385_v20  ;;  %v436_v9 = vmul.f32 0.17219259, %v435_v21  ;;  %v338_v27 = vadd.f32 %v337_v7, %v278_v19 }
  0xdc   : > { %v397_v28 = vmul.f32 %v1021_v42, %v396_v10  ;;  %v445_v29 = vadd.f32 %v443_v24, %v436_v9 }
  0xde   : > { %v398_v31 = vadd.f32 %v397_v28, %v338_v27  ;;  %v456_v32 = vadd.f32 %v454_v23, %v445_v29 }
  0xe0   : > { %v457_v39 = vmul.f32 %v1025_v44, %v456_v32 }
  0xe2   : > { %v458_v33 = vadd.f32 %v457_v39, %v398_v31 }
  0xe4   : > { %v462_v34 = vsub.f32 %v461_v40, %v458_v33 }
  0xe6   : > { %v464_v35 = vsel %vm463_vm10, %v462_v34, 0.0 }
  0xe7   : > { %465 = vadd.xlane.f32.xlu0 %v464_v35 }
 0x174   : > { %v466_v36 = vpop.xlane.xlu0 %465 }
 0x175   : > { %v467_v37 = vrot.slane %v466_v36, 4 }
 0x177   : > { %v468_v38 = vadd.f32 %v467_v37, %v466_v36 }
 0x179   : > { %v469_v42 = vrot.slane %v468_v38, 2 }
 0x17b   : > { %v470_v41 = vadd.f32 %v469_v42, %v468_v38 }
 0x17d   : > { %v471_v43 = vrot.slane %v470_v41, 1 }
 0x17f   : > { %v472_v13 = vadd.f32 %v471_v43, %v470_v41 }
 0x181   : > { %598 = vpush %v472_v13 }
 0x1b2   : > { %s599_s7 = spop %598 }
 0x1b3   : > { %v474_v44 = vstv %s599_s7 }
 0x1b4   : > { %477 = vst.msk [vmem:[%s204_s6] sm:$0x1] %vm476_vm11, %v474_v44 }
 0x1b5 PF: > { %s15_s16 = sadd.s32 1, %s783_s16   ;;  %s1096_s9 = smov %s759_s10 }
 0x1b6   : > { %p12_p11 = scmp.ge.s32.totalorder %s15_s16, 6   ;;  %s1097_s10 = smov %s763_s11 }
 0x1b7   : > { %s1098_s11 = smov %s874_s29  ;;  %s1099_s12 = smov %s775_s14 }
 0x1b8   : > { %s1100_s13 = smov %s779_s15  ;;  %s1101_s14 = smov %s1104_s18 }
 0x1b9   : > { %s1102_s15 = smov %s1108_s19  ;;  %14 = sbr.rel (!%p12_p11) target bundleno = 5 (0x5), region = 75 }
 0x1c0   :  { %503 = vsyncpa [#allocation3], 1 }
 0x1c1   :  { %505 = vsyncpa [#allocation3 + $0x1], 1 }

</bundles_post_ra>
